<compile_context>
chip_gen: v5e
topology: v5e:2x2
jax: 0.10.0
libtpu: 0.0.40
codegen_flags: <defaults>
</compile_context>

<pallas_src>
import math

import jax
import jax.numpy as jnp
from jax.experimental import pallas as pl
from jax.experimental.pallas import tpu as pltpu


def _round_up(x, m):
    return (x + m - 1) // m * m


# ---------------------------------------------------------------------------
# Kernels
# ---------------------------------------------------------------------------
def _encoder_concat_kernel(self_ref, neigh_ref, w_self_ref, w_neigh_ref, b_ref, o_ref):
    """ReLU(self @ W_top + neigh @ W_bot + b) for one row tile.

    self_ref/neigh_ref : (TILE_N, D) f32 feature tiles (cast in-kernel)
    w_self_ref/w_neigh_ref : (D, O)  resident weight slabs (compute dtype)
    b_ref : (1, O) f32 resident bias
    o_ref : (TILE_N, O) f32 output tile
    """
    cd = w_self_ref.dtype
    acc = jnp.dot(self_ref[...].astype(cd), w_self_ref[...],
                  preferred_element_type=jnp.float32)
    acc = acc + jnp.dot(neigh_ref[...].astype(cd), w_neigh_ref[...],
                        preferred_element_type=jnp.float32)
    o_ref[...] = jnp.maximum(acc + b_ref[...], 0.0).astype(o_ref.dtype)


def _encoder_sum_kernel(self_ref, neigh_ref, w_ref, b_ref, o_ref):
    """ReLU((self + neigh) @ W + b) — one matmul, f32 VPU add, single cast."""
    cd = w_ref.dtype
    combined = (self_ref[...] + neigh_ref[...]).astype(cd)
    acc = jnp.dot(combined, w_ref[...], preferred_element_type=jnp.float32)
    o_ref[...] = jnp.maximum(acc + b_ref[...], 0.0).astype(o_ref.dtype)


# ---------------------------------------------------------------------------
# Wrapper
# ---------------------------------------------------------------------------
def _vmem_capacity_bytes():
    try:
        return int(pltpu.get_tpu_info().vmem_capacity_bytes)
    except Exception:
        return 64 * 2**20   # conservative fallback (v7x per-TC VMEM)


def encoder_forward(self_feats, neigh_feats, W, b, combine="concat", *,
                    compute_dtype=jnp.bfloat16, tile_n=None):
    """JAX wrapper reproducing Encoder.forward semantics.

    self_feats : (N, D) f32   self.features(nodes)
    neigh_feats: (N, D) f32   self.aggregator.forward(nodes)
    W          : (2*D, O) if combine == 'concat' else (D, O)
    b          : (O,)
    Returns    : (N, O) f32
    """
    N, D = self_feats.shape
    O = W.shape[1]
    w_rows = 2 * D if combine == "concat" else D
    assert W.shape == (w_rows, O), (W.shape, (w_rows, O))
    assert neigh_feats.shape == (N, D)

    # Small host-side prep only (weights << features): compute-dtype cast + split.
    Wc = W.astype(compute_dtype)
    b2d = b.reshape(1, O).astype(jnp.float32)

    in_bytes = jnp.dtype(self_feats.dtype).itemsize
    w_bytes = jnp.dtype(compute_dtype).itemsize

    # --- tile_n from VMEM budget ------------------------------------------
    vmem_cap = _vmem_capacity_bytes()
    budget = int(0.6 * vmem_cap)
    resident_bytes = w_rows * O * w_bytes + O * 4          # single-buffered W + b
    per_row_bytes = 2 * (2 * D * in_bytes + O * 4)          # 2-buf in tiles + out tile
    if tile_n is None:
        avail = max(budget - resident_bytes, 8 * per_row_bytes)
        tile_n = max(8, min(2048, (avail // per_row_bytes) // 8 * 8))
        if N > 8:   # keep >= 2 grid steps so both v7x TensorCores are used
            tile_n = min(tile_n, _round_up(-(-N // 2), 8))
    tile_n = max(8, _round_up(int(tile_n), 8))
    tile_n = min(tile_n, _round_up(N, 8))

    grid = (pl.cdiv(N, tile_n),)

    # VMEM limit from the actual buffer sizes (never clamp below the estimate).
    est = (2 * 2 * tile_n * D * in_bytes       # self + neigh tiles, double-buffered
           + w_rows * O * w_bytes + O * 4      # resident weights + bias
           + 2 * tile_n * O * 4)               # output tiles, double-buffered
    vmem_limit = int(min(max(int(1.3 * est), 16 * 2**20), int(0.9 * vmem_cap)))

    out_shape = jax.ShapeDtypeStruct((N, O), jnp.float32)

    def build_and_call(single_buffer_resident):
        res_kwargs = ({"pipeline_mode": pl.Buffered(1)}
                      if single_buffer_resident else {})
        row_spec = pl.BlockSpec((tile_n, D), lambda i: (i, 0))
        b_spec = pl.BlockSpec((1, O), lambda i: (0, 0), **res_kwargs)
        out_spec = pl.BlockSpec((tile_n, O), lambda i: (i, 0))
        if combine == "concat":
            w_spec = pl.BlockSpec((D, O), lambda i: (0, 0), **res_kwargs)
            in_specs = [row_spec, row_spec, w_spec, w_spec, b_spec]
            operands = (self_feats, neigh_feats, Wc[:D], Wc[D:], b2d)
            kernel = _encoder_concat_kernel
        else:
            w_spec = pl.BlockSpec((D, O), lambda i: (0, 0), **res_kwargs)
            in_specs = [row_spec, row_spec, w_spec, b_spec]
            operands = (self_feats, neigh_feats, Wc, b2d)
            kernel = _encoder_sum_kernel
        return pl.pallas_call(
            kernel,
            out_shape=out_shape,
            grid=grid,
            in_specs=in_specs,
            out_specs=out_spec,
            compiler_params=pltpu.CompilerParams(
                dimension_semantics=("parallel",),
                vmem_limit_bytes=vmem_limit,
            ),
        )(*operands)

    try:
        return build_and_call(True)
    except Exception:
        # Fallback in case single-buffered (Buffered(1)) resident specs are
        # rejected by this jax/Mosaic version; costs only extra VMEM.
        return build_and_call(False)


# ---------------------------------------------------------------------------
# Pure-JAX reference + synthetic aggregator (stand-in for aggregator.forward)
# ---------------------------------------------------------------------------
def reference_forward(self_feats, neigh_feats, W, b, combine="concat"):
    if combine == "concat":
        combined = jnp.concatenate([self_feats, neigh_feats], axis=1)
    else:
        combined = self_feats + neigh_feats
    y = jnp.dot(combined, W, precision=jax.lax.Precision.HIGHEST) + b
    return jax.nn.relu(y)


def mean_aggregator(features, adjacency):
    """Stand-in for `self.aggregator.forward(nodes)` (mean over neighbors)."""
    deg = jnp.maximum(adjacency.sum(axis=1, keepdims=True), 1.0)
    return (adjacency @ features) / deg


if __name__ == "__main__":
    key = jax.random.PRNGKey(0)
    k_feat, k_adj, k_w1, k_w2, k_b = jax.random.split(key, 5)

    num_nodes = 256     # total nodes in the synthetic "graph"
    N = 200             # nodes encoded this call (exercises a partial row block)
    input_dim = 128     # MXU-friendly feature width
    output_dim = 32     # small O -> exercises unpadded (<128-lane) output blocks

    feature_table = jax.random.normal(k_feat, (num_nodes, input_dim), jnp.float32)
    adjacency = (jax.random.uniform(k_adj, (N, num_nodes)) < 0.1).astype(jnp.float32)

    nodes = jnp.arange(N)
    self_feats = feature_table[nodes]                        # self.features(nodes)
    neigh_feats = mean_aggregator(feature_table, adjacency)  # aggregator.forward(nodes)

    # Parameter init mirroring reset_parameters(): U(-std, std), std = 1/sqrt(O)
    std = 1.0 / math.sqrt(output_dim)
    W_concat = jax.random.uniform(k_w1, (2 * input_dim, output_dim),
                                  jnp.float32, -std, std)
    W_sum = jax.random.uniform(k_w2, (input_dim, output_dim),
                               jnp.float32, -std, std)
    b = jax.random.uniform(k_b, (output_dim,), jnp.float32, -std, std)

    for combine, W in (("concat", W_concat), ("sum", W_sum)):
        ref = reference_forward(self_feats, neigh_feats, W, b, combine=combine)

        # f32 compute path, explicit small tile (exercises fixed tiling + partial block).
        out_f32 = jax.block_until_ready(
            encoder_forward(self_feats, neigh_feats, W, b, combine=combine,
                            compute_dtype=jnp.float32, tile_n=64))
        assert out_f32.shape == (N, output_dim)
        assert jnp.allclose(out_f32, ref, atol=2e-3, rtol=2e-3), \
            f"f32 mismatch vs reference ({combine})"

        # Default bf16 MXU path with auto tile_n (VMEM-budget + 2-step cap).
        out_bf16 = jax.block_until_ready(
            encoder_forward(self_feats, neigh_feats, W, b, combine=combine))
        assert out_bf16.shape == (N, output_dim)
        assert jnp.allclose(out_bf16, ref, atol=5e-2, rtol=5e-2), \
            f"bf16 mismatch vs reference ({combine})"

    print("KERNEL_OK")
</pallas_src>

<mosaic_0001>
module attributes {stable_mosaic.version = 11 : i64} {
  func.func @_encoder_concat_kernel(%arg0: i32, %arg1: memref<64x128xf32, #tpu.memory_space<vmem>>, %arg2: memref<64x128xf32, #tpu.memory_space<vmem>>, %arg3: memref<128x32xf32, #tpu.memory_space<vmem>>, %arg4: memref<128x32xf32, #tpu.memory_space<vmem>>, %arg5: memref<1x32xf32, #tpu.memory_space<vmem>>, %arg6: memref<64x32xf32, #tpu.memory_space<vmem>>) attributes {dimension_semantics = [#tpu.dimension_semantics<parallel>], iteration_bounds = array<i64: 4>, scalar_prefetch = 0 : i64, scratch_operands = 0 : i64, tpu.core_type = #tpu.core_type<tc>, window_params = [{transform_indices = @transform_0, window_bounds = array<i64: 64, 128>}, {transform_indices = @transform_1, window_bounds = array<i64: 64, 128>}, {pipeline_mode = #tpu.pipeline_mode<synchronous>, transform_indices = @transform_2, window_bounds = array<i64: 128, 32>}, {pipeline_mode = #tpu.pipeline_mode<synchronous>, transform_indices = @transform_3, window_bounds = array<i64: 128, 32>}, {pipeline_mode = #tpu.pipeline_mode<synchronous>, transform_indices = @transform_4, window_bounds = array<i64: 1, 32>}, {transform_indices = @transform_5, window_bounds = array<i64: 64, 32>}]} {
    %c0 = arith.constant 0 : index
    %c0_0 = arith.constant 0 : index
    %0 = vector.load %arg1[%c0, %c0_0] : memref<64x128xf32, #tpu.memory_space<vmem>>, vector<64x128xf32>
    %c0_1 = arith.constant 0 : index
    %c0_2 = arith.constant 0 : index
    %1 = vector.load %arg3[%c0_1, %c0_2] : memref<128x32xf32, #tpu.memory_space<vmem>>, vector<128x32xf32>
    %cst = arith.constant dense<0.000000e+00> : vector<64x32xf32>
    %2 = tpu.matmul %0, %1, %cst {dimension_numbers = #tpu.dot_dimension_numbers<[1], [0], [0], [1], [0, 0, 1, 1], [], []>} : vector<64x128xf32>, vector<128x32xf32>, vector<64x32xf32> -> vector<64x32xf32>
    %c0_3 = arith.constant 0 : index
    %c0_4 = arith.constant 0 : index
    %3 = vector.load %arg2[%c0_3, %c0_4] : memref<64x128xf32, #tpu.memory_space<vmem>>, vector<64x128xf32>
    %c0_5 = arith.constant 0 : index
    %c0_6 = arith.constant 0 : index
    %4 = vector.load %arg4[%c0_5, %c0_6] : memref<128x32xf32, #tpu.memory_space<vmem>>, vector<128x32xf32>
    %cst_7 = arith.constant dense<0.000000e+00> : vector<64x32xf32>
    %5 = tpu.matmul %3, %4, %cst_7 {dimension_numbers = #tpu.dot_dimension_numbers<[1], [0], [0], [1], [0, 0, 1, 1], [], []>} : vector<64x128xf32>, vector<128x32xf32>, vector<64x32xf32> -> vector<64x32xf32>
    %6 = arith.addf %2, %5 : vector<64x32xf32>
    %c0_8 = arith.constant 0 : index
    %c0_9 = arith.constant 0 : index
    %7 = vector.load %arg5[%c0_8, %c0_9] : memref<1x32xf32, #tpu.memory_space<vmem>>, vector<1x32xf32>
    %8 = vector.broadcast %7 : vector<1x32xf32> to vector<64x32xf32>
    %9 = arith.addf %6, %8 : vector<64x32xf32>
    %cst_10 = arith.constant 0.000000e+00 : f32
    %10 = vector.broadcast %cst_10 : f32 to vector<64x32xf32>
    %11 = arith.maximumf %9, %10 : vector<64x32xf32>
    %c0_11 = arith.constant 0 : index
    %c0_12 = arith.constant 0 : index
    %12 = vector.load %arg6[%c0_11, %c0_12] : memref<64x32xf32, #tpu.memory_space<vmem>>, vector<64x32xf32>
    tpu.vector_store %arg6[%c0_11, %c0_12], %11 {strides = array<i32>} : memref<64x32xf32, #tpu.memory_space<vmem>>, vector<64x32xf32>,
    return
  }
  func.func @transform_0(%arg0: i32) -> (i32, i32) {
    %c0_i32 = arith.constant 0 : i32
    %c0_i32_0 = arith.constant 0 : i32
    return %arg0, %c0_i32 : i32, i32
  }
  func.func @transform_1(%arg0: i32) -> (i32, i32) {
    %c0_i32 = arith.constant 0 : i32
    %c0_i32_0 = arith.constant 0 : i32
    return %arg0, %c0_i32 : i32, i32
  }
  func.func @transform_2(%arg0: i32) -> (i32, i32) {
    %c0_i32 = arith.constant 0 : i32
    %c0_i32_0 = arith.constant 0 : i32
    %c0_i32_1 = arith.constant 0 : i32
    return %c0_i32, %c0_i32_0 : i32, i32
  }
  func.func @transform_3(%arg0: i32) -> (i32, i32) {
    %c0_i32 = arith.constant 0 : i32
    %c0_i32_0 = arith.constant 0 : i32
    %c0_i32_1 = arith.constant 0 : i32
    return %c0_i32, %c0_i32_0 : i32, i32
  }
  func.func @transform_4(%arg0: i32) -> (i32, i32) {
    %c0_i32 = arith.constant 0 : i32
    %c0_i32_0 = arith.constant 0 : i32
    %c0_i32_1 = arith.constant 0 : i32
    return %c0_i32, %c0_i32_0 : i32, i32
  }
  func.func @transform_5(%arg0: i32) -> (i32, i32) {
    %c0_i32 = arith.constant 0 : i32
    %c0_i32_0 = arith.constant 0 : i32
    return %arg0, %c0_i32 : i32, i32
  }
}

module attributes {stable_mosaic.version = 11 : i64} {
  func.func @_encoder_concat_kernel(%arg0: i32, %arg1: memref<64x128xf32, #tpu.memory_space<vmem>>, %arg2: memref<64x128xf32, #tpu.memory_space<vmem>>, %arg3: memref<128x32xf32, #tpu.memory_space<vmem>>, %arg4: memref<128x32xf32, #tpu.memory_space<vmem>>, %arg5: memref<1x32xf32, #tpu.memory_space<vmem>>, %arg6: memref<64x32xf32, #tpu.memory_space<vmem>>) attributes {dimension_semantics = [#tpu.dimension_semantics<parallel>], iteration_bounds = array<i64: 4>, scalar_prefetch = 0 : i64, scratch_operands = 0 : i64, tpu.core_type = #tpu.core_type<tc>, window_params = [{transform_indices = @transform_0, window_bounds = array<i64: 64, 128>}, {transform_indices = @transform_1, window_bounds = array<i64: 64, 128>}, {pipeline_mode = #tpu.pipeline_mode<synchronous>, transform_indices = @transform_2, window_bounds = array<i64: 128, 32>}, {pipeline_mode = #tpu.pipeline_mode<synchronous>, transform_indices = @transform_3, window_bounds = array<i64: 128, 32>}, {pipeline_mode = #tpu.pipeline_mode<synchronous>, transform_indices = @transform_4, window_bounds = array<i64: 1, 32>}, {transform_indices = @transform_5, window_bounds = array<i64: 64, 32>}]} {
    %c0 = arith.constant 0 : index
    %c0_0 = arith.constant 0 : index
    %0 = vector.load %arg1[%c0, %c0_0] : memref<64x128xf32, #tpu.memory_space<vmem>>, vector<64x128xf32>
    %c0_1 = arith.constant 0 : index
    %c0_2 = arith.constant 0 : index
    %1 = vector.load %arg3[%c0_1, %c0_2] : memref<128x32xf32, #tpu.memory_space<vmem>>, vector<128x32xf32>
    %cst = arith.constant dense<0.000000e+00> : vector<64x32xf32>
    %2 = tpu.matmul %0, %1, %cst {dimension_numbers = #tpu.dot_dimension_numbers<[1], [0], [0], [1], [0, 0, 1, 1], [], []>} : vector<64x128xf32>, vector<128x32xf32>, vector<64x32xf32> -> vector<64x32xf32>
    %c0_3 = arith.constant 0 : index
    %c0_4 = arith.constant 0 : index
    %3 = vector.load %arg2[%c0_3, %c0_4] : memref<64x128xf32, #tpu.memory_space<vmem>>, vector<64x128xf32>
    %c0_5 = arith.constant 0 : index
    %c0_6 = arith.constant 0 : index
    %4 = vector.load %arg4[%c0_5, %c0_6] : memref<128x32xf32, #tpu.memory_space<vmem>>, vector<128x32xf32>
    %cst_7 = arith.constant dense<0.000000e+00> : vector<64x32xf32>
    %5 = tpu.matmul %3, %4, %cst_7 {dimension_numbers = #tpu.dot_dimension_numbers<[1], [0], [0], [1], [0, 0, 1, 1], [], []>} : vector<64x128xf32>, vector<128x32xf32>, vector<64x32xf32> -> vector<64x32xf32>
    %6 = arith.addf %2, %5 : vector<64x32xf32>
    %c0_8 = arith.constant 0 : index
    %c0_9 = arith.constant 0 : index
    %7 = vector.load %arg5[%c0_8, %c0_9] : memref<1x32xf32, #tpu.memory_space<vmem>>, vector<1x32xf32>
    %8 = vector.broadcast %7 : vector<1x32xf32> to vector<64x32xf32>
    %9 = arith.addf %6, %8 : vector<64x32xf32>
    %cst_10 = arith.constant 0.000000e+00 : f32
    %10 = vector.broadcast %cst_10 : f32 to vector<64x32xf32>
    %11 = arith.maximumf %9, %10 : vector<64x32xf32>
    %c0_11 = arith.constant 0 : index
    %c0_12 = arith.constant 0 : index
    %12 = vector.load %arg6[%c0_11, %c0_12] : memref<64x32xf32, #tpu.memory_space<vmem>>, vector<64x32xf32>
    tpu.vector_store %arg6[%c0_11, %c0_12], %11 {strides = array<i32>} : memref<64x32xf32, #tpu.memory_space<vmem>>, vector<64x32xf32>,
    return
  }
  func.func @transform_0(%arg0: i32) -> (i32, i32) {
    %c0_i32 = arith.constant 0 : i32
    %c0_i32_0 = arith.constant 0 : i32
    return %arg0, %c0_i32 : i32, i32
  }
  func.func @transform_1(%arg0: i32) -> (i32, i32) {
    %c0_i32 = arith.constant 0 : i32
    %c0_i32_0 = arith.constant 0 : i32
    return %arg0, %c0_i32 : i32, i32
  }
  func.func @transform_2(%arg0: i32) -> (i32, i32) {
    %c0_i32 = arith.constant 0 : i32
    %c0_i32_0 = arith.constant 0 : i32
    %c0_i32_1 = arith.constant 0 : i32
    return %c0_i32, %c0_i32_0 : i32, i32
  }
  func.func @transform_3(%arg0: i32) -> (i32, i32) {
    %c0_i32 = arith.constant 0 : i32
    %c0_i32_0 = arith.constant 0 : i32
    %c0_i32_1 = arith.constant 0 : i32
    return %c0_i32, %c0_i32_0 : i32, i32
  }
  func.func @transform_4(%arg0: i32) -> (i32, i32) {
    %c0_i32 = arith.constant 0 : i32
    %c0_i32_0 = arith.constant 0 : i32
    %c0_i32_1 = arith.constant 0 : i32
    return %c0_i32, %c0_i32_0 : i32, i32
  }
  func.func @transform_5(%arg0: i32) -> (i32, i32) {
    %c0_i32 = arith.constant 0 : i32
    %c0_i32_0 = arith.constant 0 : i32
    return %arg0, %c0_i32 : i32, i32
  }
}

</mosaic_0001>

<bundles_post_ra>
// kernel: tpu_custom_call.1
= control target key start
LH: loop header
LB: loop body
LE: loop exit
PB: predicated region body
PF: predicated region fallthrough
CT: control target
= control target key end

     0   :  { %10 = vsyncpa [#allocation3], 0  ;;  %s1376_s0 = inlined_call_operand.vmem [shape: f32[200,128], index: 0, kind: input, shape index: {}]   ;;  %s1377_s1 = inlined_call_operand.hbm [shape: f32[200,128], index: 1, kind: input, shape index: {}]   ;;  %s1378_s2 = inlined_call_operand.vmem [shape: f32[128,32], index: 2, kind: input, shape index: {}]   ;;  %s1379_s3 = inlined_call_operand.vmem [shape: f32[128,32], index: 3, kind: input, shape index: {}]   ;;  %s1380_s4 = inlined_call_operand.vmem [shape: f32[1,32], index: 4, kind: input, shape index: {}]   ;;  %s1381_s5 = inlined_call_operand.vmem [shape: f32[200,32], index: 5, kind: output, shape index: {}]  }
   0x1   :  { %12 = vsyncpa [#allocation3 + $0x1], 0  ;;  %s1066_s18 = smov 0   ;;  %s1068_s19 = smov 0  }
   0x2   :  { %s1070_s20 = smov 0   ;;  %s1072_s21 = smov 0  }
   0x3 LB: > { %s1085_s22 = sadd.s32 4294967295, %s999_s21   ;;  %s1088_s23 = sadd.s32 1, %s999_s21   ;;  %s999_s21 = sphi %s1072_s21, %s1392_s21   ;;  %s995_s20 = sphi %s1070_s20, %s1391_s20   ;;  %s991_s19 = sphi %s1068_s19, %s1390_s19   ;;  %s987_s18 = sphi %s1066_s18, %s1389_s18  }
   0x4   : > { %s48_s24 = ssub.s32 %s999_s21, %s1088_s23  ;;  %s51_s25 = sadd.s32 1, %s995_s20 }
   0x5   : > { %p49_p0 = scmp.eq.s32.totalorder %s48_s24, 0  ;;  %p58_p1 = scmp.ne.s32.totalorder %s995_s20, %s991_s19 }
   0x6   : > { %p59_p2 = scmp.eq.s32.totalorder %s999_s21, 0  ;;  %p64_p3 = scmp.ne.s32.totalorder %s991_s19, %s987_s18 }
   0x7   : > { %s1098_s26 = scalar_select %p49_p0, %s995_s20, %s51_s25  }
   0x8   : > { %p60_p4 = por %p59_p2, %p58_p1  ;;  %p65_p5 = scmp.eq.s32.totalorder %s1085_s22, 0 }
   0x9   : > { %p151_p6 = scmp.eq.s32.totalorder %s1085_s22, 3  ;;  %p728_p9 = scmp.ge.s32.totalorder %s999_s21, 4 }
   0xa   : > { %p1102_p7 = por %p65_p5, %p64_p3 }
   0xb   : > { %p1106_p8 = por %p151_p6, %p58_p1  ;;  %182 = sbr.rel (%p728_p9) target bundleno = 52 (0x34), region = 28 }
  0x10   : > { %202 = sbr.rel (!%p60_p4) target bundleno = 52 (0x34), region = 36  ;;  %s203_s29 = sand.u32 (%p60_p4), 1, %s995_s20  }
  0x11   : > { %s730_s30 = sshll.u32 (%p60_p4), %s999_s21, 3  ;;  %s729_s6 = sshll.u32 (%p60_p4), %s203_s29, 6 }
  0x12   : > { %s209_s7 = ssub.s32 (%p60_p4), 25, %s730_s30  ;;  %s1116_s11 = scalar_lea.sflag (%p60_p4), [#allocation3], %s203_s29 }
  0x13   : > { %p210_p10 = scmp.lt.s32.totalorder (%p60_p4), %s209_s7, 8  ;;  %s207_s12 = scalar_lea.vmem (%p60_p4), [#allocation2], %s729_s6 }
  0x15   : > { %s1394_s7 = smov (!%p210_p10, %s209_s7), 8 }
  0x16   : > { %s731_s8 = sshll.u32 %s1394_s7, 3 }
  0x17   : > { %s213_s9 = ssub.s32 64, %s731_s8 }
  0x18   : > { %s214_s10 = sshll.u32 %s213_s9, 4 }
  0x19   : > { %215 = vsyncadd %s1116_s11, %s214_s10  ;;  %p1119_p11 = scmp.ne.s32.totalorder %s731_s8, 0  ;;  %s758_s14 = sshll.u32 %s999_s21, 6 }
  0x1a   : > { %s218_s17 = scalar_lea.hbm %s1377_s1, %s758_s14  ;;  %s1127_s18 = sshll.u32 %s207_s12, 4  ;;  %s223_s18 = int_to_ptr.vmem [resolvable:$true] %s1127_s18 }
  0x1b   : > { %s220_s24 = sshll.u32 %s218_s17, 4  ;;  %s735_s25 = sshll.u32 %s1394_s7, 7  ;;  %s1130_s24 = int_to_ptr.hbm [resolvable:$true] %s220_s24 }
  0x1c   : > { %s894_s29 = sshra.s32 %s1130_s24, 4  ;;  %s896_s30 = sshrl.u32 %s735_s25, 4  ;;  %s895_s29 = int_to_ptr.hbm [resolvable:$true] %s894_s29 }
  0x1d   : > { %s901_s6 = scalar_lea.hbm %s895_s29, %s896_s30  ;;  %s905_s10 = scalar_lea.hbm %s1377_s1, 200 }
  0x1e   : > { %p902_p12 = scmp.ne.s32.totalorder %s895_s29, %s901_s6  ;;  %p906_p1 = scmp.lt.s32.totalorder %s895_s29, %s1377_s1 }
  0x1f   : > { %p907_p2 = scmp.lt.s32.totalorder %s905_s10, %s901_s6 }
  0x20   : > { %p903_p13 = pnand %p902_p12, %p1119_p11 }
  0x21   : > { %p908_p3 = por %p907_p2, %p906_p1 }
  0x22   : > { %p904_p0 = pneg %p903_p13 }
  0x24   : > { %p909_p4 = pnand %p908_p3, %p904_p0 }
  0x26   : > { %912 = shalt.err (!%p909_p4)
}
  0x27   : > { %s913_s15 = sshra.s32 %s223_s18, 4  ;;  %s1033_s17 = smov [#allocation2]   ;;  %s914_s15 = int_to_ptr.vmem [resolvable:$true] %s913_s15 }
  0x28   : > { %s920_s16 = scalar_lea.vmem %s914_s15, %s896_s30  ;;  %s924_s8 = scalar_lea.vmem %s1033_s17, 128 }
  0x29   : > { %p921_p5 = scmp.ne.s32.totalorder %s914_s15, %s920_s16  ;;  %p926_p10 = scmp.lt.s32.totalorder %s924_s8, %s920_s16 }
  0x2b   : > { %p922_p6 = pnand %p921_p5, %p1119_p11 }
  0x2d   : > { %p923_p9 = pneg %p922_p6 }
  0x2f   : > { %p928_p12 = pnand %p926_p10, %p923_p9 }
  0x31   : > { %931 = shalt.err (!%p928_p12)
}
  0x32   : > { %s1034_s29 = smov 128   ;;  %s1035_s6 = smov 8  }
  0x33   : > { %228 = dma.hbm_to_vmem [thread:$0]  (%p1119_p11), %s1130_s24, %s735_s25, %s223_s18, %s1116_s11, %s1034_s29, %s1034_s29, %s1035_s6  }
  0x34 PF: > { %p736_p13 = scmp.ge.s32.totalorder %s999_s21, 1  ;;  %p230_p0 = scmp.lt.s32.totalorder %s999_s21, 5 }
  0x36   : > { %p231_p1 = pnand %p736_p13, %p230_p0 }
  0x37   : > { %s236_s30 = sand.u32 (!%p231_p1), 1, %s991_s19  }
  0x38   : > { %234 = sbr.rel (%p231_p1) target bundleno = 300 (0x12c), region = 40  ;;  %s1159_s9 = sshll.u32 (!%p231_p1), %s236_s30, 6 }
  0x39   : > { %s237_s10 = scalar_lea.sflag (!%p231_p1), [#allocation3], %s236_s30  ;;  %s1162_s12 = scalar_lea.vmem (!%p231_p1), [#allocation2], %s1159_s9 }
  0x3d   : > { %982 = dma.done.wait (%p1102_p7), %s237_s10, 1024  }
  0x3e   : > { %984 = vsyncadd (%p1102_p7), %s237_s10, 4294966272  ;;  %v347_v0 = vld [vmem:[%s1379_s3 + $0x78] sm:$0xff]  ;;  %v346_v2 = vld [vmem:[%s1379_s3 + $0x70] sm:$0xff]  ;;  %s1217_s30 = sshll.u32 %s1085_s22, 3  ;;  %vm450_vm0 = vcmask 261120   ;;  %s759_s25 = sshll.u32 (%p1106_p8), %s1085_s22, 6 }
  0x3f   : > { %v323_v1 = vld [vmem:[%s1378_s2 + $0x78] sm:$0xff]  ;;  %762 = vmatpush.msra.mxu2 %v347_v0  ;;  %v322_v3 = vld [vmem:[%s1378_s2 + $0x70] sm:$0xff]  ;;  %v345_v4 = vld [vmem:[%s1379_s3 + $0x68] sm:$0xff]  ;;  %348 = vmatpush.msra.mxu0 %v347_v0  ;;  %p281_p7 = scmp.lt.s32.totalorder %s1217_s30, 24  ;;  %s1319_s15 = scalar_lea.vmem (%p1106_p8), %s1381_s5, %s759_s25  }
  0x40   : > { %778 = vmatpush.msra.mxu3 %v323_v1  ;;  %v321_v5 = vld [vmem:[%s1378_s2 + $0x68] sm:$0xff]  ;;  %389 = vmatpush.msra.mxu1 %v323_v1  ;;  %v344_v6 = vld [vmem:[%s1379_s3 + $0x60] sm:$0xff]  ;;  %v343_v8 = vld [vmem:[%s1379_s3 + $0x58] sm:$0xff] }
  0x41   : > { %763 = vmatpush.msra.mxu2 %v346_v2  ;;  %v320_v7 = vld [vmem:[%s1378_s2 + $0x60] sm:$0xff]  ;;  %349 = vmatpush.msra.mxu0 %v346_v2  ;;  %v319_v9 = vld [vmem:[%s1378_s2 + $0x58] sm:$0xff]  ;;  %v342_v10 = vld [vmem:[%s1379_s3 + $0x50] sm:$0xff]  ;;  %s282_s17 = scalar_select %p281_p7, %s1217_s30, 24 }
  0x42   : > { %779 = vmatpush.msra.mxu3 %v322_v3  ;;  %390 = vmatpush.msra.mxu1 %v322_v3  ;;  %v318_v11 = vld [vmem:[%s1378_s2 + $0x50] sm:$0xff]  ;;  %v341_v12 = vld [vmem:[%s1379_s3 + $0x48] sm:$0xff]  ;;  %v340_v14 = vld [vmem:[%s1379_s3 + $0x40] sm:$0xff] }
  0x43   : > { %764 = vmatpush.msra.mxu2 %v345_v4  ;;  %350 = vmatpush.msra.mxu0 %v345_v4  ;;  %v317_v13 = vld [vmem:[%s1378_s2 + $0x48] sm:$0xff]  ;;  %v316_v15 = vld [vmem:[%s1378_s2 + $0x40] sm:$0xff]  ;;  %v339_v16 = vld [vmem:[%s1379_s3 + $0x38] sm:$0xff]  ;;  %s740_s18 = sshll.u32 %s282_s17, 3 }
  0x44   : > { %780 = vmatpush.msra.mxu3 %v321_v5  ;;  %391 = vmatpush.msra.mxu1 %v321_v5  ;;  %v315_v17 = vld [vmem:[%s1378_s2 + $0x38] sm:$0xff]  ;;  %v338_v18 = vld [vmem:[%s1379_s3 + $0x30] sm:$0xff]  ;;  %v337_v20 = vld [vmem:[%s1379_s3 + $0x28] sm:$0xff]  ;;  %s1266_s10 = scalar_lea.vmem %s1376_s0, %s740_s18 }
  0x45   : > { %765 = vmatpush.msra.mxu2 %v344_v6  ;;  %351 = vmatpush.msra.mxu0 %v344_v6  ;;  %v314_v19 = vld [vmem:[%s1378_s2 + $0x30] sm:$0xff]  ;;  %v313_v21 = vld [vmem:[%s1378_s2 + $0x28] sm:$0xff]  ;;  %v336_v22 = vld [vmem:[%s1379_s3 + $0x20] sm:$0xff] }
  0x46   : > { %781 = vmatpush.msra.mxu3 %v320_v7  ;;  %392 = vmatpush.msra.mxu1 %v320_v7  ;;  %v312_v23 = vld [vmem:[%s1378_s2 + $0x20] sm:$0xff]  ;;  %v335_v24 = vld [vmem:[%s1379_s3 + $0x18] sm:$0xff]  ;;  %v334_v26 = vld [vmem:[%s1379_s3 + $0x10] sm:$0xff] }
  0x47   : > { %766 = vmatpush.msra.mxu2 %v343_v8  ;;  %352 = vmatpush.msra.mxu0 %v343_v8  ;;  %v311_v25 = vld [vmem:[%s1378_s2 + $0x18] sm:$0xff]  ;;  %v310_v27 = vld [vmem:[%s1378_s2 + $0x10] sm:$0xff]  ;;  %v333_v28 = vld [vmem:[%s1379_s3 + $0x8] sm:$0xff] }
  0x48   : > { %782 = vmatpush.msra.mxu3 %v319_v9  ;;  %393 = vmatpush.msra.mxu1 %v319_v9  ;;  %v309_v29 = vld [vmem:[%s1378_s2 + $0x8] sm:$0xff]  ;;  %v332_v30 = vld [vmem:[%s1379_s3] sm:$0xff]  ;;  %v330_v40 = vld [vmem:[%s1162_s12 + $0x30] sm:$0xff] }
  0x49   : > { %767 = vmatpush.msra.mxu2 %v342_v10  ;;  %353 = vmatpush.msra.mxu0 %v342_v10  ;;  %v308_v31 = vld [vmem:[%s1378_s2] sm:$0xff]  ;;  %v329_v36 = vld [vmem:[%s1162_s12 + $0x28] sm:$0xff]  ;;  %v306_v41 = vld [vmem:[%s1266_s10 + $0x30] sm:$0xff] }
  0x4a   : > { %783 = vmatpush.msra.mxu3 %v318_v11  ;;  %394 = vmatpush.msra.mxu1 %v318_v11  ;;  %v328_v32 = vld [vmem:[%s1162_s12 + $0x20] sm:$0xff]  ;;  %v305_v37 = vld [vmem:[%s1266_s10 + $0x28] sm:$0xff]  ;;  %v326_v42 = vld [vmem:[%s1162_s12 + $0x10] sm:$0xff] }
  0x4b   : > { %768 = vmatpush.msra.mxu2 %v341_v12  ;;  %354 = vmatpush.msra.mxu0 %v341_v12  ;;  %v304_v33 = vld [vmem:[%s1266_s10 + $0x20] sm:$0xff]  ;;  %v325_v38 = vld [vmem:[%s1162_s12 + $0x8] sm:$0xff]  ;;  %v302_v43 = vld [vmem:[%s1266_s10 + $0x10] sm:$0xff] }
  0x4c   : > { %784 = vmatpush.msra.mxu3 %v317_v13  ;;  %395 = vmatpush.msra.mxu1 %v317_v13  ;;  %v324_v34 = vld [vmem:[%s1162_s12] sm:$0xff]  ;;  %v301_v39 = vld [vmem:[%s1266_s10 + $0x8] sm:$0xff]  ;;  %v331_v44 = vld [vmem:[%s1162_s12 + $0x38] sm:$0xff] }
  0x4d   : > { %769 = vmatpush.msra.mxu2 %v340_v14  ;;  %355 = vmatpush.msra.mxu0 %v340_v14  ;;  %v300_v35 = vld [vmem:[%s1266_s10] sm:$0xff]  ;;  %v307_v45 = vld [vmem:[%s1266_s10 + $0x38] sm:$0xff] }
  0x4e   : > { %785 = vmatpush.msra.mxu3 %v316_v15  ;;  %396 = vmatpush.msra.mxu1 %v316_v15  ;;  %v327_v46 = vld [vmem:[%s1162_s12 + $0x18] sm:$0xff]  ;;  %v893_v48 = vld [vmem:[%s1380_s4] ss:$0 sm:$0xff]  ;;  %s1294_s12 = scalar_lea.vmem [#allocation4], %s1159_s9   ;;  %s467_s9 = ssub.s32 (%p1106_p8), 25, %s1217_s30 }
  0x4f   : > { %770 = vmatpush.msra.mxu2 %v339_v16  ;;  %356 = vmatpush.msra.mxu0 %v339_v16  ;;  %v303_v47 = vld [vmem:[%s1266_s10 + $0x18] sm:$0xff]  ;;  %p468_p11 = scmp.lt.s32.totalorder (%p1106_p8), %s467_s9, 8 }
  0x50   : > { %786 = vmatpush.msra.mxu3 %v315_v17  ;;  %397 = vmatpush.msra.mxu1 %v315_v17 }
  0x51   : > { %771 = vmatpush.msra.mxu2 %v338_v18  ;;  %357 = vmatpush.msra.mxu0 %v338_v18 }
  0x52   : > { %787 = vmatpush.msra.mxu3 %v314_v19  ;;  %398 = vmatpush.msra.mxu1 %v314_v19 }
  0x53   : > { %772 = vmatpush.msra.mxu2 %v337_v20  ;;  %358 = vmatpush.msra.mxu0 %v337_v20 }
  0x54   : > { %788 = vmatpush.msra.mxu3 %v313_v21  ;;  %399 = vmatpush.msra.mxu1 %v313_v21 }
  0x55   : > { %773 = vmatpush.msra.mxu2 %v336_v22  ;;  %359 = vmatpush.msra.mxu0 %v336_v22 }
  0x56   : > { %789 = vmatpush.msra.mxu3 %v312_v23  ;;  %400 = vmatpush.msra.mxu1 %v312_v23 }
  0x57   : > { %774 = vmatpush.msra.mxu2 %v335_v24  ;;  %360 = vmatpush.msra.mxu0 %v335_v24 }
  0x58   : > { %790 = vmatpush.msra.mxu3 %v311_v25  ;;  %401 = vmatpush.msra.mxu1 %v311_v25 }
  0x59   : > { %775 = vmatpush.msra.mxu2 %v334_v26  ;;  %361 = vmatpush.msra.mxu0 %v334_v26 }
  0x5a   : > { %791 = vmatpush.msra.mxu3 %v310_v27  ;;  %402 = vmatpush.msra.mxu1 %v310_v27 }
  0x5b   : > { %776 = vmatpush.msra.mxu2 %v333_v28  ;;  %362 = vmatpush.msra.mxu0 %v333_v28 }
  0x5c   : > { %792 = vmatpush.msra.mxu3 %v309_v29  ;;  %403 = vmatpush.msra.mxu1 %v309_v29 }
  0x5d   : > { %777 = vmatpush.msra.mxu2 %v332_v30  ;;  %363 = vmatpush.msra.mxu0 %v332_v30 }
  0x5e   : > { %793 = vmatpush.msra.mxu3 %v308_v31  ;;  %376 = vmatmul.f32.vlgmr.msra.gmra.mxu2 %v328_v32 }
  0x5f   : > { %417 = vmatmul.f32.vlgmr.msra.gmra.mxu3 %v304_v33  ;;  %404 = vmatpush.msra.mxu1 %v308_v31 }
  0x60   : > { %364 = vmatmul.f32.vlgmr.msra.gmra.mxu0 %v324_v34  ;;  %405 = vmatmul.f32.vlgmr.msra.gmra.mxu1 %v300_v35 }
  0x66   : > { %379 = vmatmul.f32.gmra.mxu2 %v329_v36 }
  0x67   : > { %420 = vmatmul.f32.gmra.mxu3 %v305_v37 }
  0x68   : > { %367 = vmatmul.f32.gmra.mxu0 %v325_v38  ;;  %408 = vmatmul.f32.gmra.mxu1 %v301_v39 }
  0x6e   : > { %382 = vmatmul.f32.gmra.mxu2 %v330_v40 }
  0x6f   : > { %423 = vmatmul.f32.gmra.mxu3 %v306_v41 }
  0x70   : > { %370 = vmatmul.f32.gmra.mxu0 %v326_v42  ;;  %411 = vmatmul.f32.gmra.mxu1 %v302_v43 }
  0x76   : > { %385 = vmatmul.f32.gmra.mxu2 %v331_v44 }
  0x77   : > { %426 = vmatmul.f32.gmra.mxu3 %v307_v45 }
  0x78   : > { %373 = vmatmul.f32.gmra.mxu0 %v327_v46  ;;  %414 = vmatmul.f32.gmra.mxu1 %v303_v47 }
  0xdd   : > { %v365_v49 = vpop.f32.mrf.mxu0  ;;  %v406_v50 = vpop.f32.mrf.mxu1 }
  0xde   : > { %v407_v51 = vadd.f32 %v406_v50, %v365_v49 }
  0xe0   : > { %v434_v52 = vadd.f32 %v893_v48, %v407_v51 }
  0xe1   : > { %v377_v53 = vpop.f32.mrf.mxu2 }
  0xe2   : > { %v418_v54 = vpop.f32.mrf.mxu3  ;;  %v442_v55 = vmax.f32 %v434_v52, 0.0 }
  0xe3   : > { %v419_v56 = vadd.f32 %v418_v54, %v377_v53 }
  0xe4   : > { %451 = vst.msk [vmem:[%s1294_s12] sm:$0xff] %vm450_vm0, %v442_v55 }
  0xe5   : > { %v438_v57 = vadd.f32 %v893_v48, %v419_v56  ;;  %v368_v58 = vpop.f32.mrf.mxu0  ;;  %v409_v59 = vpop.f32.mrf.mxu1 }
  0xe6   : > { %v410_v61 = vadd.f32 %v409_v59, %v368_v58 }
  0xe7   : > { %v446_v60 = vmax.f32 %v438_v57, 0.0 }
  0xe8   : > { %v435_v62 = vadd.f32 %v893_v48, %v410_v61 }
  0xe9   : > { %455 = vst.msk [vmem:[%s1294_s12 + $0x20] sm:$0xff] %vm450_vm0, %v446_v60  ;;  %v380_v63 = vpop.f32.mrf.mxu2 }
  0xea   : > { %v421_v0 = vpop.f32.mrf.mxu3  ;;  %v443_v1 = vmax.f32 %v435_v62, 0.0 }
  0xeb   : > { %v422_v2 = vadd.f32 %v421_v0, %v380_v63 }
  0xec   : > { %452 = vst.msk [vmem:[%s1294_s12 + $0x8] sm:$0xff] %vm450_vm0, %v443_v1 }
  0xed   : > { %v439_v3 = vadd.f32 %v893_v48, %v422_v2  ;;  %v371_v4 = vpop.f32.mrf.mxu0  ;;  %v412_v5 = vpop.f32.mrf.mxu1 }
  0xee   : > { %v413_v7 = vadd.f32 %v412_v5, %v371_v4 }
  0xef   : > { %v447_v6 = vmax.f32 %v439_v3, 0.0 }
  0xf0   : > { %v436_v8 = vadd.f32 %v893_v48, %v413_v7 }
  0xf1   : > { %456 = vst.msk [vmem:[%s1294_s12 + $0x28] sm:$0xff] %vm450_vm0, %v447_v6  ;;  %v383_v9 = vpop.f32.mrf.mxu2 }
  0xf2   : > { %v424_v10 = vpop.f32.mrf.mxu3  ;;  %v444_v11 = vmax.f32 %v436_v8, 0.0 }
  0xf3   : > { %v425_v12 = vadd.f32 %v424_v10, %v383_v9 }
  0xf4   : > { %453 = vst.msk [vmem:[%s1294_s12 + $0x10] sm:$0xff] %vm450_vm0, %v444_v11 }
  0xf5   : > { %v440_v13 = vadd.f32 %v893_v48, %v425_v12  ;;  %v374_v14 = vpop.f32.mrf.mxu0  ;;  %v415_v15 = vpop.f32.mrf.mxu1 }
  0xf6   : > { %v416_v17 = vadd.f32 %v415_v15, %v374_v14 }
  0xf7   : > { %v448_v16 = vmax.f32 %v440_v13, 0.0 }
  0xf8   : > { %v437_v18 = vadd.f32 %v893_v48, %v416_v17 }
  0xf9   : > { %457 = vst.msk [vmem:[%s1294_s12 + $0x30] sm:$0xff] %vm450_vm0, %v448_v16  ;;  %v386_v19 = vpop.f32.mrf.mxu2 }
  0xfa   : > { %v427_v20 = vpop.f32.mrf.mxu3  ;;  %v445_v21 = vmax.f32 %v437_v18, 0.0 }
  0xfb   : > { %v428_v22 = vadd.f32 %v427_v20, %v386_v19 }
  0xfc   : > { %454 = vst.msk [vmem:[%s1294_s12 + $0x18] sm:$0xff] %vm450_vm0, %v445_v21 }
  0xfd   : > { %v441_v23 = vadd.f32 %v893_v48, %v428_v22  ;;  %465 = sbr.rel (!%p1106_p8) target bundleno = 300 (0x12c), region = 48 }
  0xff   : > { %v449_v24 = vmax.f32 %v441_v23, 0.0 }
 0x101   : > { %458 = vst.msk [vmem:[%s1294_s12 + $0x38] sm:$0xff] %vm450_vm0, %v449_v24 }
 0x102   : > { %s1396_s9 = smov (!%p468_p11, %s467_s9), 8 }
 0x103   : > { %s743_s16 = sshll.u32 %s1396_s9, 3 }
 0x104   : > { %p746_p2 = scmp.eq.s32.totalorder %s743_s16, 0 }
 0x105   : > { %s1325_s8 = sshrl.u32 (!%p746_p2), %s1396_s9, 3 }
 0x106   : > { %476 = sbr.rel (%p746_p2) target bundleno = 300 (0x12c), region = 52  ;;  %p747_p8 = scmp.le.s32.totalorder (!%p746_p2), %s1325_s8, 0 }
 0x10b   : > { %673 = sbr.rel (%p747_p8) target bundleno = 283 (0x11b), region = 137  ;;  %s1385_s22 = smov (!%p747_p8), %s1319_s15 }
 0x10c   : > { %s1386_s28 = smov (!%p747_p8), %s1294_s12  ;;  %s1334_s30 = smov (!%p747_p8), 0  }
 0x10d   : > { %s1336_s29 = smov (!%p747_p8), 0  }
 0x110 LB: >> { %v553_v25 = vld [vmem:[%s1007_s28] sm:$0xff]  ;;  %v555_v26 = vld [vmem:[%s1007_s28 + $0x8] sm:$0xff]  ;;  %v557_v27 = vld [vmem:[%s1007_s28 + $0x10] sm:$0xff]  ;;  %s569_s17 = sadd.s32 1, %s1011_s30  ;;  %s547_s29 = sadd.s32 1, %s1015_s29   ;;  %s1015_s29 = sphi %s1336_s29, %s547_s29   ;;  %s1011_s30 = sphi %s1334_s30, %s1388_s30   ;;  %s1007_s28 = sphi %s1386_s28, %s574_s28   ;;  %s1003_s22 = sphi %s1385_s22, %s1387_s22  }
 0x111   : >> { %554 = vst [vmem:[%s1003_s22] sm:$0xff] %v553_v25  ;;  %v559_v28 = vld [vmem:[%s1007_s28 + $0x18] sm:$0xff]  ;;  %p570_p3 = scmp.ge.s32.totalorder %s569_s17, %s1325_s8  ;;  %v561_v29 = vld [vmem:[%s1007_s28 + $0x20] sm:$0xff]  ;;  %v563_v30 = vld [vmem:[%s1007_s28 + $0x28] sm:$0xff]  ;;  %p546_p4 = scmp.ge.s32.totalorder %s547_s29, %s1325_s8 }
 0x112   : >> { %556 = vst [vmem:[%s1003_s22 + $0x8] sm:$0xff] %v555_v26  ;;  %v565_v31 = vld [vmem:[%s1007_s28 + $0x30] sm:$0xff]  ;;  %v567_v32 = vld [vmem:[%s1007_s28 + $0x38] sm:$0xff] }
 0x113   : >> { %558 = vst [vmem:[%s1003_s22 + $0x10] sm:$0xff] %v557_v27  ;;  %s1398_s17 = smov (%p570_p3, %s569_s17), 0 }
 0x114   : >> { %560 = vst [vmem:[%s1003_s22 + $0x18] sm:$0xff] %v559_v28  ;;  %s748_s6 = sshll.u32 %s1398_s17, 6  ;;  %s1388_s30 = smov %s1398_s17 }
 0x115   : >> { %562 = vst [vmem:[%s1003_s22 + $0x20] sm:$0xff] %v561_v29  ;;  %s574_s28 = scalar_lea.vmem %s1294_s12, %s748_s6 [#allocation4]   ;;  %s575_s10 = scalar_lea.vmem %s1319_s15, %s748_s6  }
 0x116   : >> { %564 = vst [vmem:[%s1003_s22 + $0x28] sm:$0xff] %v563_v30  ;;  %549 = sbr.rel (!%p546_p4) target bundleno = 272 (0x110), region = 143 }
 0x117   : >> { %566 = vst [vmem:[%s1003_s22 + $0x30] sm:$0xff] %v565_v31 }
 0x118   : >> { %568 = vst [vmem:[%s1003_s22 + $0x38] sm:$0xff] %v567_v32  ;;  %s1387_s22 = smov %s575_s10 }
 0x11b PF: > { %s1355_s7 = sand.u32 7, %s1396_s9   ;;  %s760_s11 = sshll.u32 %s1325_s8, 6 }
 0x11c   : > { %s580_s21 = scalar_lea.vmem %s1294_s12, %s760_s11 [#allocation4]   ;;  %s582_s13 = scalar_lea.vmem %s1319_s15, %s760_s11  }
 0x11d   : > { %p753_p5 = scmp.le.s32.totalorder %s1355_s7, 0 }
 0x11e   : > { %s1017_s18 = smov (!%p753_p5), %s582_s13   ;;  %s1021_s24 = smov (!%p753_p5), %s580_s21  }
 0x11f   : > { %687 = sbr.rel (%p753_p5) target bundleno = 300 (0x12c), region = 148  ;;  %s1025_s25 = smov (!%p753_p5), 0  }
 0x120   : > { %s1029_s14 = smov (!%p753_p5), 0  }
 0x124 LB: >> { %v592_v33 = vld [vmem:[%s1023_s24] sm:$0xff]  ;;  %s594_s9 = sadd.s32 1, %s1027_s25  ;;  %s586_s14 = sadd.s32 1, %s1031_s14   ;;  %s1031_s14 = sphi %s1029_s14, %s586_s14   ;;  %s1027_s25 = sphi %s1025_s25, %s1026_s25   ;;  %s1023_s24 = sphi %s1021_s24, %s599_s24   ;;  %s1019_s18 = sphi %s1017_s18, %s600_s18  }
 0x125   : >> { %593 = vst [vmem:[%s1019_s18] sm:$0xff] %v592_v33  ;;  %p595_p6 = scmp.ge.s32.totalorder %s594_s9, %s1355_s7  ;;  %p585_p9 = scmp.ge.s32.totalorder %s586_s14, %s1355_s7 }
 0x127   : >> { %s1400_s9 = smov (%p595_p6, %s594_s9), 0  ;;  %588 = sbr.rel (!%p585_p9) target bundleno = 292 (0x124), region = 154 }
 0x128   : >> { %s754_s12 = sshll.u32 %s1400_s9, 3  ;;  %s1026_s25 = smov %s1400_s9  }
 0x129   : >> { %s599_s24 = scalar_lea.vmem %s580_s21, %s754_s12 [#allocation4]   ;;  %s600_s18 = scalar_lea.vmem %s582_s13, %s754_s12  }
 0x12c PF: > { %p15_p10 = scmp.ge.s32.totalorder %s1088_s23, 6   ;;  %s1389_s18 = smov %s991_s19 }
 0x12d   : > { %s1390_s19 = smov %s995_s20  ;;  %s1391_s20 = smov %s1098_s26 }
 0x12e   : > { %s1392_s21 = smov %s1088_s23  ;;  %17 = sbr.rel (!%p15_p10) target bundleno = 3 (0x3), region = 165 }
 0x133   :  { %616 = vsyncpa [#allocation3], 1 }
 0x134   :  { %618 = vsyncpa [#allocation3 + $0x1], 1 }

// kernel: tpu_custom_call.1
= control target key start
LH: loop header
LB: loop body
LE: loop exit
PB: predicated region body
PF: predicated region fallthrough
CT: control target
= control target key end

     0   :  { %10 = vsyncpa [#allocation3], 0  ;;  %s1376_s0 = inlined_call_operand.vmem [shape: f32[200,128], index: 0, kind: input, shape index: {}]   ;;  %s1377_s1 = inlined_call_operand.hbm [shape: f32[200,128], index: 1, kind: input, shape index: {}]   ;;  %s1378_s2 = inlined_call_operand.vmem [shape: f32[128,32], index: 2, kind: input, shape index: {}]   ;;  %s1379_s3 = inlined_call_operand.vmem [shape: f32[128,32], index: 3, kind: input, shape index: {}]   ;;  %s1380_s4 = inlined_call_operand.vmem [shape: f32[1,32], index: 4, kind: input, shape index: {}]   ;;  %s1381_s5 = inlined_call_operand.vmem [shape: f32[200,32], index: 5, kind: output, shape index: {}]  }
   0x1   :  { %12 = vsyncpa [#allocation3 + $0x1], 0  ;;  %s1066_s18 = smov 0   ;;  %s1068_s19 = smov 0  }
   0x2   :  { %s1070_s20 = smov 0   ;;  %s1072_s21 = smov 0  }
   0x3 LB: > { %s1085_s22 = sadd.s32 4294967295, %s999_s21   ;;  %s1088_s23 = sadd.s32 1, %s999_s21   ;;  %s999_s21 = sphi %s1072_s21, %s1392_s21   ;;  %s995_s20 = sphi %s1070_s20, %s1391_s20   ;;  %s991_s19 = sphi %s1068_s19, %s1390_s19   ;;  %s987_s18 = sphi %s1066_s18, %s1389_s18  }
   0x4   : > { %s48_s24 = ssub.s32 %s999_s21, %s1088_s23  ;;  %s51_s25 = sadd.s32 1, %s995_s20 }
   0x5   : > { %p49_p0 = scmp.eq.s32.totalorder %s48_s24, 0  ;;  %p58_p1 = scmp.ne.s32.totalorder %s995_s20, %s991_s19 }
   0x6   : > { %p59_p2 = scmp.eq.s32.totalorder %s999_s21, 0  ;;  %p64_p3 = scmp.ne.s32.totalorder %s991_s19, %s987_s18 }
   0x7   : > { %s1098_s26 = scalar_select %p49_p0, %s995_s20, %s51_s25  }
   0x8   : > { %p60_p4 = por %p59_p2, %p58_p1  ;;  %p65_p5 = scmp.eq.s32.totalorder %s1085_s22, 0 }
   0x9   : > { %p151_p6 = scmp.eq.s32.totalorder %s1085_s22, 3  ;;  %p728_p9 = scmp.ge.s32.totalorder %s999_s21, 4 }
   0xa   : > { %p1102_p7 = por %p65_p5, %p64_p3 }
   0xb   : > { %p1106_p8 = por %p151_p6, %p58_p1  ;;  %182 = sbr.rel (%p728_p9) target bundleno = 52 (0x34), region = 28 }
  0x10   : > { %202 = sbr.rel (!%p60_p4) target bundleno = 52 (0x34), region = 36  ;;  %s203_s29 = sand.u32 (%p60_p4), 1, %s995_s20  }
  0x11   : > { %s730_s30 = sshll.u32 (%p60_p4), %s999_s21, 3  ;;  %s729_s6 = sshll.u32 (%p60_p4), %s203_s29, 6 }
  0x12   : > { %s209_s7 = ssub.s32 (%p60_p4), 25, %s730_s30  ;;  %s1116_s11 = scalar_lea.sflag (%p60_p4), [#allocation3], %s203_s29 }
  0x13   : > { %p210_p10 = scmp.lt.s32.totalorder (%p60_p4), %s209_s7, 8  ;;  %s207_s12 = scalar_lea.vmem (%p60_p4), [#allocation2], %s729_s6 }
  0x15   : > { %s1394_s7 = smov (!%p210_p10, %s209_s7), 8 }
  0x16   : > { %s731_s8 = sshll.u32 %s1394_s7, 3 }
  0x17   : > { %s213_s9 = ssub.s32 64, %s731_s8 }
  0x18   : > { %s214_s10 = sshll.u32 %s213_s9, 4 }
  0x19   : > { %215 = vsyncadd %s1116_s11, %s214_s10  ;;  %p1119_p11 = scmp.ne.s32.totalorder %s731_s8, 0  ;;  %s758_s14 = sshll.u32 %s999_s21, 6 }
  0x1a   : > { %s218_s17 = scalar_lea.hbm %s1377_s1, %s758_s14  ;;  %s1127_s18 = sshll.u32 %s207_s12, 4  ;;  %s223_s18 = int_to_ptr.vmem [resolvable:$true] %s1127_s18 }
  0x1b   : > { %s220_s24 = sshll.u32 %s218_s17, 4  ;;  %s735_s25 = sshll.u32 %s1394_s7, 7  ;;  %s1130_s24 = int_to_ptr.hbm [resolvable:$true] %s220_s24 }
  0x1c   : > { %s894_s29 = sshra.s32 %s1130_s24, 4  ;;  %s896_s30 = sshrl.u32 %s735_s25, 4  ;;  %s895_s29 = int_to_ptr.hbm [resolvable:$true] %s894_s29 }
  0x1d   : > { %s901_s6 = scalar_lea.hbm %s895_s29, %s896_s30  ;;  %s905_s10 = scalar_lea.hbm %s1377_s1, 200 }
  0x1e   : > { %p902_p12 = scmp.ne.s32.totalorder %s895_s29, %s901_s6  ;;  %p906_p1 = scmp.lt.s32.totalorder %s895_s29, %s1377_s1 }
  0x1f   : > { %p907_p2 = scmp.lt.s32.totalorder %s905_s10, %s901_s6 }
  0x20   : > { %p903_p13 = pnand %p902_p12, %p1119_p11 }
  0x21   : > { %p908_p3 = por %p907_p2, %p906_p1 }
  0x22   : > { %p904_p0 = pneg %p903_p13 }
  0x24   : > { %p909_p4 = pnand %p908_p3, %p904_p0 }
  0x26   : > { %912 = shalt.err (!%p909_p4)
}
  0x27   : > { %s913_s15 = sshra.s32 %s223_s18, 4  ;;  %s1033_s17 = smov [#allocation2]   ;;  %s914_s15 = int_to_ptr.vmem [resolvable:$true] %s913_s15 }
  0x28   : > { %s920_s16 = scalar_lea.vmem %s914_s15, %s896_s30  ;;  %s924_s8 = scalar_lea.vmem %s1033_s17, 128 }
  0x29   : > { %p921_p5 = scmp.ne.s32.totalorder %s914_s15, %s920_s16  ;;  %p926_p10 = scmp.lt.s32.totalorder %s924_s8, %s920_s16 }
  0x2b   : > { %p922_p6 = pnand %p921_p5, %p1119_p11 }
  0x2d   : > { %p923_p9 = pneg %p922_p6 }
  0x2f   : > { %p928_p12 = pnand %p926_p10, %p923_p9 }
  0x31   : > { %931 = shalt.err (!%p928_p12)
}
  0x32   : > { %s1034_s29 = smov 128   ;;  %s1035_s6 = smov 8  }
  0x33   : > { %228 = dma.hbm_to_vmem [thread:$0]  (%p1119_p11), %s1130_s24, %s735_s25, %s223_s18, %s1116_s11, %s1034_s29, %s1034_s29, %s1035_s6  }
  0x34 PF: > { %p736_p13 = scmp.ge.s32.totalorder %s999_s21, 1  ;;  %p230_p0 = scmp.lt.s32.totalorder %s999_s21, 5 }
  0x36   : > { %p231_p1 = pnand %p736_p13, %p230_p0 }
  0x37   : > { %s236_s30 = sand.u32 (!%p231_p1), 1, %s991_s19  }
  0x38   : > { %234 = sbr.rel (%p231_p1) target bundleno = 300 (0x12c), region = 40  ;;  %s1159_s9 = sshll.u32 (!%p231_p1), %s236_s30, 6 }
  0x39   : > { %s237_s10 = scalar_lea.sflag (!%p231_p1), [#allocation3], %s236_s30  ;;  %s1162_s12 = scalar_lea.vmem (!%p231_p1), [#allocation2], %s1159_s9 }
  0x3d   : > { %982 = dma.done.wait (%p1102_p7), %s237_s10, 1024  }
  0x3e   : > { %984 = vsyncadd (%p1102_p7), %s237_s10, 4294966272  ;;  %v347_v0 = vld [vmem:[%s1379_s3 + $0x78] sm:$0xff]  ;;  %v346_v2 = vld [vmem:[%s1379_s3 + $0x70] sm:$0xff]  ;;  %s1217_s30 = sshll.u32 %s1085_s22, 3  ;;  %vm450_vm0 = vcmask 261120   ;;  %s759_s25 = sshll.u32 (%p1106_p8), %s1085_s22, 6 }
  0x3f   : > { %v323_v1 = vld [vmem:[%s1378_s2 + $0x78] sm:$0xff]  ;;  %762 = vmatpush.msra.mxu2 %v347_v0  ;;  %v322_v3 = vld [vmem:[%s1378_s2 + $0x70] sm:$0xff]  ;;  %v345_v4 = vld [vmem:[%s1379_s3 + $0x68] sm:$0xff]  ;;  %348 = vmatpush.msra.mxu0 %v347_v0  ;;  %p281_p7 = scmp.lt.s32.totalorder %s1217_s30, 24  ;;  %s1319_s15 = scalar_lea.vmem (%p1106_p8), %s1381_s5, %s759_s25  }
  0x40   : > { %778 = vmatpush.msra.mxu3 %v323_v1  ;;  %v321_v5 = vld [vmem:[%s1378_s2 + $0x68] sm:$0xff]  ;;  %389 = vmatpush.msra.mxu1 %v323_v1  ;;  %v344_v6 = vld [vmem:[%s1379_s3 + $0x60] sm:$0xff]  ;;  %v343_v8 = vld [vmem:[%s1379_s3 + $0x58] sm:$0xff] }
  0x41   : > { %763 = vmatpush.msra.mxu2 %v346_v2  ;;  %v320_v7 = vld [vmem:[%s1378_s2 + $0x60] sm:$0xff]  ;;  %349 = vmatpush.msra.mxu0 %v346_v2  ;;  %v319_v9 = vld [vmem:[%s1378_s2 + $0x58] sm:$0xff]  ;;  %v342_v10 = vld [vmem:[%s1379_s3 + $0x50] sm:$0xff]  ;;  %s282_s17 = scalar_select %p281_p7, %s1217_s30, 24 }
  0x42   : > { %779 = vmatpush.msra.mxu3 %v322_v3  ;;  %390 = vmatpush.msra.mxu1 %v322_v3  ;;  %v318_v11 = vld [vmem:[%s1378_s2 + $0x50] sm:$0xff]  ;;  %v341_v12 = vld [vmem:[%s1379_s3 + $0x48] sm:$0xff]  ;;  %v340_v14 = vld [vmem:[%s1379_s3 + $0x40] sm:$0xff] }
  0x43   : > { %764 = vmatpush.msra.mxu2 %v345_v4  ;;  %350 = vmatpush.msra.mxu0 %v345_v4  ;;  %v317_v13 = vld [vmem:[%s1378_s2 + $0x48] sm:$0xff]  ;;  %v316_v15 = vld [vmem:[%s1378_s2 + $0x40] sm:$0xff]  ;;  %v339_v16 = vld [vmem:[%s1379_s3 + $0x38] sm:$0xff]  ;;  %s740_s18 = sshll.u32 %s282_s17, 3 }
  0x44   : > { %780 = vmatpush.msra.mxu3 %v321_v5  ;;  %391 = vmatpush.msra.mxu1 %v321_v5  ;;  %v315_v17 = vld [vmem:[%s1378_s2 + $0x38] sm:$0xff]  ;;  %v338_v18 = vld [vmem:[%s1379_s3 + $0x30] sm:$0xff]  ;;  %v337_v20 = vld [vmem:[%s1379_s3 + $0x28] sm:$0xff]  ;;  %s1266_s10 = scalar_lea.vmem %s1376_s0, %s740_s18 }
  0x45   : > { %765 = vmatpush.msra.mxu2 %v344_v6  ;;  %351 = vmatpush.msra.mxu0 %v344_v6  ;;  %v314_v19 = vld [vmem:[%s1378_s2 + $0x30] sm:$0xff]  ;;  %v313_v21 = vld [vmem:[%s1378_s2 + $0x28] sm:$0xff]  ;;  %v336_v22 = vld [vmem:[%s1379_s3 + $0x20] sm:$0xff] }
  0x46   : > { %781 = vmatpush.msra.mxu3 %v320_v7  ;;  %392 = vmatpush.msra.mxu1 %v320_v7  ;;  %v312_v23 = vld [vmem:[%s1378_s2 + $0x20] sm:$0xff]  ;;  %v335_v24 = vld [vmem:[%s1379_s3 + $0x18] sm:$0xff]  ;;  %v334_v26 = vld [vmem:[%s1379_s3 + $0x10] sm:$0xff] }
  0x47   : > { %766 = vmatpush.msra.mxu2 %v343_v8  ;;  %352 = vmatpush.msra.mxu0 %v343_v8  ;;  %v311_v25 = vld [vmem:[%s1378_s2 + $0x18] sm:$0xff]  ;;  %v310_v27 = vld [vmem:[%s1378_s2 + $0x10] sm:$0xff]  ;;  %v333_v28 = vld [vmem:[%s1379_s3 + $0x8] sm:$0xff] }
  0x48   : > { %782 = vmatpush.msra.mxu3 %v319_v9  ;;  %393 = vmatpush.msra.mxu1 %v319_v9  ;;  %v309_v29 = vld [vmem:[%s1378_s2 + $0x8] sm:$0xff]  ;;  %v332_v30 = vld [vmem:[%s1379_s3] sm:$0xff]  ;;  %v330_v40 = vld [vmem:[%s1162_s12 + $0x30] sm:$0xff] }
  0x49   : > { %767 = vmatpush.msra.mxu2 %v342_v10  ;;  %353 = vmatpush.msra.mxu0 %v342_v10  ;;  %v308_v31 = vld [vmem:[%s1378_s2] sm:$0xff]  ;;  %v329_v36 = vld [vmem:[%s1162_s12 + $0x28] sm:$0xff]  ;;  %v306_v41 = vld [vmem:[%s1266_s10 + $0x30] sm:$0xff] }
  0x4a   : > { %783 = vmatpush.msra.mxu3 %v318_v11  ;;  %394 = vmatpush.msra.mxu1 %v318_v11  ;;  %v328_v32 = vld [vmem:[%s1162_s12 + $0x20] sm:$0xff]  ;;  %v305_v37 = vld [vmem:[%s1266_s10 + $0x28] sm:$0xff]  ;;  %v326_v42 = vld [vmem:[%s1162_s12 + $0x10] sm:$0xff] }
  0x4b   : > { %768 = vmatpush.msra.mxu2 %v341_v12  ;;  %354 = vmatpush.msra.mxu0 %v341_v12  ;;  %v304_v33 = vld [vmem:[%s1266_s10 + $0x20] sm:$0xff]  ;;  %v325_v38 = vld [vmem:[%s1162_s12 + $0x8] sm:$0xff]  ;;  %v302_v43 = vld [vmem:[%s1266_s10 + $0x10] sm:$0xff] }
  0x4c   : > { %784 = vmatpush.msra.mxu3 %v317_v13  ;;  %395 = vmatpush.msra.mxu1 %v317_v13  ;;  %v324_v34 = vld [vmem:[%s1162_s12] sm:$0xff]  ;;  %v301_v39 = vld [vmem:[%s1266_s10 + $0x8] sm:$0xff]  ;;  %v331_v44 = vld [vmem:[%s1162_s12 + $0x38] sm:$0xff] }
  0x4d   : > { %769 = vmatpush.msra.mxu2 %v340_v14  ;;  %355 = vmatpush.msra.mxu0 %v340_v14  ;;  %v300_v35 = vld [vmem:[%s1266_s10] sm:$0xff]  ;;  %v307_v45 = vld [vmem:[%s1266_s10 + $0x38] sm:$0xff] }
  0x4e   : > { %785 = vmatpush.msra.mxu3 %v316_v15  ;;  %396 = vmatpush.msra.mxu1 %v316_v15  ;;  %v327_v46 = vld [vmem:[%s1162_s12 + $0x18] sm:$0xff]  ;;  %v893_v48 = vld [vmem:[%s1380_s4] ss:$0 sm:$0xff]  ;;  %s1294_s12 = scalar_lea.vmem [#allocation4], %s1159_s9   ;;  %s467_s9 = ssub.s32 (%p1106_p8), 25, %s1217_s30 }
  0x4f   : > { %770 = vmatpush.msra.mxu2 %v339_v16  ;;  %356 = vmatpush.msra.mxu0 %v339_v16  ;;  %v303_v47 = vld [vmem:[%s1266_s10 + $0x18] sm:$0xff]  ;;  %p468_p11 = scmp.lt.s32.totalorder (%p1106_p8), %s467_s9, 8 }
  0x50   : > { %786 = vmatpush.msra.mxu3 %v315_v17  ;;  %397 = vmatpush.msra.mxu1 %v315_v17 }
  0x51   : > { %771 = vmatpush.msra.mxu2 %v338_v18  ;;  %357 = vmatpush.msra.mxu0 %v338_v18 }
  0x52   : > { %787 = vmatpush.msra.mxu3 %v314_v19  ;;  %398 = vmatpush.msra.mxu1 %v314_v19 }
  0x53   : > { %772 = vmatpush.msra.mxu2 %v337_v20  ;;  %358 = vmatpush.msra.mxu0 %v337_v20 }
  0x54   : > { %788 = vmatpush.msra.mxu3 %v313_v21  ;;  %399 = vmatpush.msra.mxu1 %v313_v21 }
  0x55   : > { %773 = vmatpush.msra.mxu2 %v336_v22  ;;  %359 = vmatpush.msra.mxu0 %v336_v22 }
  0x56   : > { %789 = vmatpush.msra.mxu3 %v312_v23  ;;  %400 = vmatpush.msra.mxu1 %v312_v23 }
  0x57   : > { %774 = vmatpush.msra.mxu2 %v335_v24  ;;  %360 = vmatpush.msra.mxu0 %v335_v24 }
  0x58   : > { %790 = vmatpush.msra.mxu3 %v311_v25  ;;  %401 = vmatpush.msra.mxu1 %v311_v25 }
  0x59   : > { %775 = vmatpush.msra.mxu2 %v334_v26  ;;  %361 = vmatpush.msra.mxu0 %v334_v26 }
  0x5a   : > { %791 = vmatpush.msra.mxu3 %v310_v27  ;;  %402 = vmatpush.msra.mxu1 %v310_v27 }
  0x5b   : > { %776 = vmatpush.msra.mxu2 %v333_v28  ;;  %362 = vmatpush.msra.mxu0 %v333_v28 }
  0x5c   : > { %792 = vmatpush.msra.mxu3 %v309_v29  ;;  %403 = vmatpush.msra.mxu1 %v309_v29 }
  0x5d   : > { %777 = vmatpush.msra.mxu2 %v332_v30  ;;  %363 = vmatpush.msra.mxu0 %v332_v30 }
  0x5e   : > { %793 = vmatpush.msra.mxu3 %v308_v31  ;;  %376 = vmatmul.f32.vlgmr.msra.gmra.mxu2 %v328_v32 }
  0x5f   : > { %417 = vmatmul.f32.vlgmr.msra.gmra.mxu3 %v304_v33  ;;  %404 = vmatpush.msra.mxu1 %v308_v31 }
  0x60   : > { %364 = vmatmul.f32.vlgmr.msra.gmra.mxu0 %v324_v34  ;;  %405 = vmatmul.f32.vlgmr.msra.gmra.mxu1 %v300_v35 }
  0x66   : > { %379 = vmatmul.f32.gmra.mxu2 %v329_v36 }
  0x67   : > { %420 = vmatmul.f32.gmra.mxu3 %v305_v37 }
  0x68   : > { %367 = vmatmul.f32.gmra.mxu0 %v325_v38  ;;  %408 = vmatmul.f32.gmra.mxu1 %v301_v39 }
  0x6e   : > { %382 = vmatmul.f32.gmra.mxu2 %v330_v40 }
  0x6f   : > { %423 = vmatmul.f32.gmra.mxu3 %v306_v41 }
  0x70   : > { %370 = vmatmul.f32.gmra.mxu0 %v326_v42  ;;  %411 = vmatmul.f32.gmra.mxu1 %v302_v43 }
  0x76   : > { %385 = vmatmul.f32.gmra.mxu2 %v331_v44 }
  0x77   : > { %426 = vmatmul.f32.gmra.mxu3 %v307_v45 }
  0x78   : > { %373 = vmatmul.f32.gmra.mxu0 %v327_v46  ;;  %414 = vmatmul.f32.gmra.mxu1 %v303_v47 }
  0xdd   : > { %v365_v49 = vpop.f32.mrf.mxu0  ;;  %v406_v50 = vpop.f32.mrf.mxu1 }
  0xde   : > { %v407_v51 = vadd.f32 %v406_v50, %v365_v49 }
  0xe0   : > { %v434_v52 = vadd.f32 %v893_v48, %v407_v51 }
  0xe1   : > { %v377_v53 = vpop.f32.mrf.mxu2 }
  0xe2   : > { %v418_v54 = vpop.f32.mrf.mxu3  ;;  %v442_v55 = vmax.f32 %v434_v52, 0.0 }
  0xe3   : > { %v419_v56 = vadd.f32 %v418_v54, %v377_v53 }
  0xe4   : > { %451 = vst.msk [vmem:[%s1294_s12] sm:$0xff] %vm450_vm0, %v442_v55 }
  0xe5   : > { %v438_v57 = vadd.f32 %v893_v48, %v419_v56  ;;  %v368_v58 = vpop.f32.mrf.mxu0  ;;  %v409_v59 = vpop.f32.mrf.mxu1 }
  0xe6   : > { %v410_v61 = vadd.f32 %v409_v59, %v368_v58 }
  0xe7   : > { %v446_v60 = vmax.f32 %v438_v57, 0.0 }
  0xe8   : > { %v435_v62 = vadd.f32 %v893_v48, %v410_v61 }
  0xe9   : > { %455 = vst.msk [vmem:[%s1294_s12 + $0x20] sm:$0xff] %vm450_vm0, %v446_v60  ;;  %v380_v63 = vpop.f32.mrf.mxu2 }
  0xea   : > { %v421_v0 = vpop.f32.mrf.mxu3  ;;  %v443_v1 = vmax.f32 %v435_v62, 0.0 }
  0xeb   : > { %v422_v2 = vadd.f32 %v421_v0, %v380_v63 }
  0xec   : > { %452 = vst.msk [vmem:[%s1294_s12 + $0x8] sm:$0xff] %vm450_vm0, %v443_v1 }
  0xed   : > { %v439_v3 = vadd.f32 %v893_v48, %v422_v2  ;;  %v371_v4 = vpop.f32.mrf.mxu0  ;;  %v412_v5 = vpop.f32.mrf.mxu1 }
  0xee   : > { %v413_v7 = vadd.f32 %v412_v5, %v371_v4 }
  0xef   : > { %v447_v6 = vmax.f32 %v439_v3, 0.0 }
  0xf0   : > { %v436_v8 = vadd.f32 %v893_v48, %v413_v7 }
  0xf1   : > { %456 = vst.msk [vmem:[%s1294_s12 + $0x28] sm:$0xff] %vm450_vm0, %v447_v6  ;;  %v383_v9 = vpop.f32.mrf.mxu2 }
  0xf2   : > { %v424_v10 = vpop.f32.mrf.mxu3  ;;  %v444_v11 = vmax.f32 %v436_v8, 0.0 }
  0xf3   : > { %v425_v12 = vadd.f32 %v424_v10, %v383_v9 }
  0xf4   : > { %453 = vst.msk [vmem:[%s1294_s12 + $0x10] sm:$0xff] %vm450_vm0, %v444_v11 }
  0xf5   : > { %v440_v13 = vadd.f32 %v893_v48, %v425_v12  ;;  %v374_v14 = vpop.f32.mrf.mxu0  ;;  %v415_v15 = vpop.f32.mrf.mxu1 }
  0xf6   : > { %v416_v17 = vadd.f32 %v415_v15, %v374_v14 }
  0xf7   : > { %v448_v16 = vmax.f32 %v440_v13, 0.0 }
  0xf8   : > { %v437_v18 = vadd.f32 %v893_v48, %v416_v17 }
  0xf9   : > { %457 = vst.msk [vmem:[%s1294_s12 + $0x30] sm:$0xff] %vm450_vm0, %v448_v16  ;;  %v386_v19 = vpop.f32.mrf.mxu2 }
  0xfa   : > { %v427_v20 = vpop.f32.mrf.mxu3  ;;  %v445_v21 = vmax.f32 %v437_v18, 0.0 }
  0xfb   : > { %v428_v22 = vadd.f32 %v427_v20, %v386_v19 }
  0xfc   : > { %454 = vst.msk [vmem:[%s1294_s12 + $0x18] sm:$0xff] %vm450_vm0, %v445_v21 }
  0xfd   : > { %v441_v23 = vadd.f32 %v893_v48, %v428_v22  ;;  %465 = sbr.rel (!%p1106_p8) target bundleno = 300 (0x12c), region = 48 }
  0xff   : > { %v449_v24 = vmax.f32 %v441_v23, 0.0 }
 0x101   : > { %458 = vst.msk [vmem:[%s1294_s12 + $0x38] sm:$0xff] %vm450_vm0, %v449_v24 }
 0x102   : > { %s1396_s9 = smov (!%p468_p11, %s467_s9), 8 }
 0x103   : > { %s743_s16 = sshll.u32 %s1396_s9, 3 }
 0x104   : > { %p746_p2 = scmp.eq.s32.totalorder %s743_s16, 0 }
 0x105   : > { %s1325_s8 = sshrl.u32 (!%p746_p2), %s1396_s9, 3 }
 0x106   : > { %476 = sbr.rel (%p746_p2) target bundleno = 300 (0x12c), region = 52  ;;  %p747_p8 = scmp.le.s32.totalorder (!%p746_p2), %s1325_s8, 0 }
 0x10b   : > { %673 = sbr.rel (%p747_p8) target bundleno = 283 (0x11b), region = 137  ;;  %s1385_s22 = smov (!%p747_p8), %s1319_s15 }
 0x10c   : > { %s1386_s28 = smov (!%p747_p8), %s1294_s12  ;;  %s1334_s30 = smov (!%p747_p8), 0  }
 0x10d   : > { %s1336_s29 = smov (!%p747_p8), 0  }
 0x110 LB: >> { %v553_v25 = vld [vmem:[%s1007_s28] sm:$0xff]  ;;  %v555_v26 = vld [vmem:[%s1007_s28 + $0x8] sm:$0xff]  ;;  %v557_v27 = vld [vmem:[%s1007_s28 + $0x10] sm:$0xff]  ;;  %s569_s17 = sadd.s32 1, %s1011_s30  ;;  %s547_s29 = sadd.s32 1, %s1015_s29   ;;  %s1015_s29 = sphi %s1336_s29, %s547_s29   ;;  %s1011_s30 = sphi %s1334_s30, %s1388_s30   ;;  %s1007_s28 = sphi %s1386_s28, %s574_s28   ;;  %s1003_s22 = sphi %s1385_s22, %s1387_s22  }
 0x111   : >> { %554 = vst [vmem:[%s1003_s22] sm:$0xff] %v553_v25  ;;  %v559_v28 = vld [vmem:[%s1007_s28 + $0x18] sm:$0xff]  ;;  %p570_p3 = scmp.ge.s32.totalorder %s569_s17, %s1325_s8  ;;  %v561_v29 = vld [vmem:[%s1007_s28 + $0x20] sm:$0xff]  ;;  %v563_v30 = vld [vmem:[%s1007_s28 + $0x28] sm:$0xff]  ;;  %p546_p4 = scmp.ge.s32.totalorder %s547_s29, %s1325_s8 }
 0x112   : >> { %556 = vst [vmem:[%s1003_s22 + $0x8] sm:$0xff] %v555_v26  ;;  %v565_v31 = vld [vmem:[%s1007_s28 + $0x30] sm:$0xff]  ;;  %v567_v32 = vld [vmem:[%s1007_s28 + $0x38] sm:$0xff] }
 0x113   : >> { %558 = vst [vmem:[%s1003_s22 + $0x10] sm:$0xff] %v557_v27  ;;  %s1398_s17 = smov (%p570_p3, %s569_s17), 0 }
 0x114   : >> { %560 = vst [vmem:[%s1003_s22 + $0x18] sm:$0xff] %v559_v28  ;;  %s748_s6 = sshll.u32 %s1398_s17, 6  ;;  %s1388_s30 = smov %s1398_s17 }
 0x115   : >> { %562 = vst [vmem:[%s1003_s22 + $0x20] sm:$0xff] %v561_v29  ;;  %s574_s28 = scalar_lea.vmem %s1294_s12, %s748_s6 [#allocation4]   ;;  %s575_s10 = scalar_lea.vmem %s1319_s15, %s748_s6  }
 0x116   : >> { %564 = vst [vmem:[%s1003_s22 + $0x28] sm:$0xff] %v563_v30  ;;  %549 = sbr.rel (!%p546_p4) target bundleno = 272 (0x110), region = 143 }
 0x117   : >> { %566 = vst [vmem:[%s1003_s22 + $0x30] sm:$0xff] %v565_v31 }
 0x118   : >> { %568 = vst [vmem:[%s1003_s22 + $0x38] sm:$0xff] %v567_v32  ;;  %s1387_s22 = smov %s575_s10 }
 0x11b PF: > { %s1355_s7 = sand.u32 7, %s1396_s9   ;;  %s760_s11 = sshll.u32 %s1325_s8, 6 }
 0x11c   : > { %s580_s21 = scalar_lea.vmem %s1294_s12, %s760_s11 [#allocation4]   ;;  %s582_s13 = scalar_lea.vmem %s1319_s15, %s760_s11  }
 0x11d   : > { %p753_p5 = scmp.le.s32.totalorder %s1355_s7, 0 }
 0x11e   : > { %s1017_s18 = smov (!%p753_p5), %s582_s13   ;;  %s1021_s24 = smov (!%p753_p5), %s580_s21  }
 0x11f   : > { %687 = sbr.rel (%p753_p5) target bundleno = 300 (0x12c), region = 148  ;;  %s1025_s25 = smov (!%p753_p5), 0  }
 0x120   : > { %s1029_s14 = smov (!%p753_p5), 0  }
 0x124 LB: >> { %v592_v33 = vld [vmem:[%s1023_s24] sm:$0xff]  ;;  %s594_s9 = sadd.s32 1, %s1027_s25  ;;  %s586_s14 = sadd.s32 1, %s1031_s14   ;;  %s1031_s14 = sphi %s1029_s14, %s586_s14   ;;  %s1027_s25 = sphi %s1025_s25, %s1026_s25   ;;  %s1023_s24 = sphi %s1021_s24, %s599_s24   ;;  %s1019_s18 = sphi %s1017_s18, %s600_s18  }
 0x125   : >> { %593 = vst [vmem:[%s1019_s18] sm:$0xff] %v592_v33  ;;  %p595_p6 = scmp.ge.s32.totalorder %s594_s9, %s1355_s7  ;;  %p585_p9 = scmp.ge.s32.totalorder %s586_s14, %s1355_s7 }
 0x127   : >> { %s1400_s9 = smov (%p595_p6, %s594_s9), 0  ;;  %588 = sbr.rel (!%p585_p9) target bundleno = 292 (0x124), region = 154 }
 0x128   : >> { %s754_s12 = sshll.u32 %s1400_s9, 3  ;;  %s1026_s25 = smov %s1400_s9  }
 0x129   : >> { %s599_s24 = scalar_lea.vmem %s580_s21, %s754_s12 [#allocation4]   ;;  %s600_s18 = scalar_lea.vmem %s582_s13, %s754_s12  }
 0x12c PF: > { %p15_p10 = scmp.ge.s32.totalorder %s1088_s23, 6   ;;  %s1389_s18 = smov %s991_s19 }
 0x12d   : > { %s1390_s19 = smov %s995_s20  ;;  %s1391_s20 = smov %s1098_s26 }
 0x12e   : > { %s1392_s21 = smov %s1088_s23  ;;  %17 = sbr.rel (!%p15_p10) target bundleno = 3 (0x3), region = 165 }
 0x133   :  { %616 = vsyncpa [#allocation3], 1 }
 0x134   :  { %618 = vsyncpa [#allocation3 + $0x1], 1 }

</bundles_post_ra>
